<compile_context>
chip_gen: v6e
topology: v6e:2x2x1
jax: 0.10.0
libtpu: 0.0.40
codegen_flags: <defaults>
</compile_context>

<pallas_src>
import functools

import jax
import jax.numpy as jnp
from jax.experimental import pallas as pl
from jax.experimental.pallas import tpu as pltpu


def _round_up(x, m):
    return ((x + m - 1) // m) * m


def _med_loss_kernel(pred_ref, tgt_ref, out_ref, acc_ref, *, inv_n):
    """One grid step over a lane-dense (3, TILE_N) tile.

    pred_ref / tgt_ref: (3, TILE_N) VMEM tiles (rows = x/y/z, lanes = points).
    out_ref:            (1, 1) SMEM scalar output (written on last step only).
    acc_ref:            (1, TILE_N) f32 VMEM per-lane partial sums.
    """
    i = pl.program_id(0)

    @pl.when(i == 0)
    def _init():
        acc_ref[...] = jnp.zeros_like(acc_ref)

    p = pred_ref[...].astype(jnp.float32)          # (3, TILE_N)
    t = tgt_ref[...].astype(jnp.float32)
    d = p - t                                      # VPU
    d0 = d[0:1, :]
    d1 = d[1:2, :]
    d2 = d[2:3, :]
    sq = d0 * d0 + d1 * d1 + d2 * d2               # (1, TILE_N)  pure VPU
    acc_ref[...] += jnp.sqrt(sq)                   # EUP sqrt + VPU add

    @pl.when(i == pl.num_programs(0) - 1)
    def _finalize():
        # Single cross-lane (XLU) reduce, once, in the epilogue.
        out_ref[0, 0] = jnp.sum(acc_ref[...]) * inv_n


def med_loss(predicted, target, *, tile_n=32768):
    """Mean Euclidean Distance loss.

    Args:
      predicted: [B, K, 3] array (K = 32 in the reference module).
      target:    [B, K, 3] array.
      tile_n:    lane-tile size along the flattened B*K axis (multiple of 128).
    Returns:
      scalar float32 loss.
    """
    assert predicted.shape == target.shape
    B, K, C = predicted.shape
    assert C == 3, "MEDLoss expects xyz coordinates in the last dim"
    n = B * K

    # Lane-dense layout: (3, N) -- the big axis sits on the 128-lane dim.
    pred_t = predicted.reshape(n, C).T
    tgt_t = target.reshape(n, C).T

    # Tile along N; zero-pad N up to a multiple of the tile.
    tile_n = max(128, min(int(tile_n), _round_up(n, 128)))
    tile_n = _round_up(tile_n, 128)
    n_pad = _round_up(n, tile_n)
    if n_pad != n:
        pad = ((0, 0), (0, n_pad - n))
        pred_t = jnp.pad(pred_t, pad)
        tgt_t = jnp.pad(tgt_t, pad)

    grid = (n_pad // tile_n,)
    kernel = functools.partial(_med_loss_kernel, inv_n=1.0 / float(n))

    out = pl.pallas_call(
        kernel,
        out_shape=jax.ShapeDtypeStruct((1, 1), jnp.float32),
        grid_spec=pltpu.PrefetchScalarGridSpec(
            num_scalar_prefetch=0,
            grid=grid,
            in_specs=[
                pl.BlockSpec((C, tile_n), lambda i: (0, i)),
                pl.BlockSpec((C, tile_n), lambda i: (0, i)),
            ],
            out_specs=pl.BlockSpec(memory_space=pltpu.MemorySpace.SMEM),
            scratch_shapes=[pltpu.VMEM((1, tile_n), jnp.float32)],
        ),
        compiler_params=pltpu.CompilerParams(
            dimension_semantics=("arbitrary",),
        ),
    )(pred_t, tgt_t)
    return out[0, 0]


def med_loss_ref(predicted, target):
    """Pure-JAX reference (mirrors the PyTorch forward)."""
    diff = predicted - target
    dist = jnp.sqrt(jnp.sum(diff * diff, axis=2))
    return jnp.mean(dist)


if __name__ == "__main__":
    key = jax.random.PRNGKey(0)
    k1, k2 = jax.random.split(key)

    # Shapes implied by the module docstring: [B, 32, 3].
    B, K, C = 2, 32, 3
    predicted = jax.random.normal(k1, (B, K, C), dtype=jnp.float32)
    target = jax.random.normal(k2, (B, K, C), dtype=jnp.float32)

    loss = jax.jit(med_loss)(predicted, target)
    loss = jax.block_until_ready(loss)
    ref = med_loss_ref(predicted, target)
    assert jnp.allclose(loss, ref, rtol=1e-5, atol=1e-5), (loss, ref)

    # Second check: exercise a multi-step grid + tail padding
    # (N = 5*32 = 160 with 128-wide tiles -> 2 grid steps, 96 padded lanes).
    B2 = 5
    p2 = jax.random.normal(k1, (B2, K, C), dtype=jnp.float32)
    t2 = jax.random.normal(k2, (B2, K, C), dtype=jnp.float32)
    loss2 = jax.jit(functools.partial(med_loss, tile_n=128))(p2, t2)
    loss2 = jax.block_until_ready(loss2)
    ref2 = med_loss_ref(p2, t2)
    assert jnp.allclose(loss2, ref2, rtol=1e-5, atol=1e-5), (loss2, ref2)

    print("KERNEL_OK")
</pallas_src>

<mosaic_0001>
module attributes {stable_mosaic.version = 11 : i64} {
  func.func @_med_loss_kernel(%arg0: i32, %arg1: memref<3x128xf32, #tpu.memory_space<vmem>>, %arg2: memref<3x128xf32, #tpu.memory_space<vmem>>, %arg3: memref<1x1xf32, #tpu.memory_space<smem>>, %arg4: memref<1x128xf32, #tpu.memory_space<vmem>>) attributes {dimension_semantics = [#tpu.dimension_semantics<arbitrary>], iteration_bounds = array<i64: 1>, scalar_prefetch = 0 : i64, scratch_operands = 1 : i64, tpu.core_type = #tpu.core_type<tc>, window_params = [{transform_indices = @transform_0, window_bounds = array<i64: 3, 128>}, {transform_indices = @transform_1, window_bounds = array<i64: 3, 128>}, {transform_indices = @transform_2, window_bounds = array<i64: 1, 1>}]} {
    %c0_i32 = arith.constant 0 : i32
    %0 = arith.cmpi eq, %arg0, %c0_i32 : i32
    %1 = arith.extui %0 : i1 to i32
    %c0_i32_0 = arith.constant 0 : i32
    %2 = arith.cmpi ne, %1, %c0_i32_0 : i32
    scf.if %2 {
      %cst = arith.constant 0.000000e+00 : f32
      %21 = vector.broadcast %cst : f32 to vector<1x128xf32>
      %c0_10 = arith.constant 0 : index
      %c0_11 = arith.constant 0 : index
      %22 = vector.load %arg4[%c0_10, %c0_11] : memref<1x128xf32, #tpu.memory_space<vmem>>, vector<1x128xf32>
      tpu.vector_store %arg4[%c0_10, %c0_11], %21 {strides = array<i32>} : memref<1x128xf32, #tpu.memory_space<vmem>>, vector<1x128xf32>,
    } else {
    }
    %c0 = arith.constant 0 : index
    %c0_1 = arith.constant 0 : index
    %3 = vector.load %arg1[%c0, %c0_1] : memref<3x128xf32, #tpu.memory_space<vmem>>, vector<3x128xf32>
    %c0_2 = arith.constant 0 : index
    %c0_3 = arith.constant 0 : index
    %4 = vector.load %arg2[%c0_2, %c0_3] : memref<3x128xf32, #tpu.memory_space<vmem>>, vector<3x128xf32>
    %5 = arith.subf %3, %4 : vector<3x128xf32>
    %6 = vector.extract_strided_slice %5 {offsets = [0, 0], sizes = [1, 128], strides = [1, 1]} : vector<3x128xf32> to vector<1x128xf32>
    %7 = vector.extract_strided_slice %5 {offsets = [1, 0], sizes = [1, 128], strides = [1, 1]} : vector<3x128xf32> to vector<1x128xf32>
    %8 = vector.extract_strided_slice %5 {offsets = [2, 0], sizes = [1, 128], strides = [1, 1]} : vector<3x128xf32> to vector<1x128xf32>
    %9 = arith.mulf %6, %6 : vector<1x128xf32>
    %10 = arith.mulf %7, %7 : vector<1x128xf32>
    %11 = arith.addf %9, %10 : vector<1x128xf32>
    %12 = arith.mulf %8, %8 : vector<1x128xf32>
    %13 = arith.addf %11, %12 : vector<1x128xf32>
    %c0_4 = arith.constant 0 : index
    %c0_5 = arith.constant 0 : index
    %14 = vector.load %arg4[%c0_4, %c0_5] : memref<1x128xf32, #tpu.memory_space<vmem>>, vector<1x128xf32>
    %15 = math.sqrt %13 : vector<1x128xf32>
    %16 = arith.addf %14, %15 : vector<1x128xf32>
    %c0_6 = arith.constant 0 : index
    %c0_7 = arith.constant 0 : index
    %17 = vector.load %arg4[%c0_6, %c0_7] : memref<1x128xf32, #tpu.memory_space<vmem>>, vector<1x128xf32>
    tpu.vector_store %arg4[%c0_6, %c0_7], %16 {strides = array<i32>} : memref<1x128xf32, #tpu.memory_space<vmem>>, vector<1x128xf32>,
    %c0_i32_8 = arith.constant 0 : i32
    %18 = arith.cmpi eq, %arg0, %c0_i32_8 : i32
    %19 = arith.extui %18 : i1 to i32
    %c0_i32_9 = arith.constant 0 : i32
    %20 = arith.cmpi ne, %19, %c0_i32_9 : i32
    scf.if %20 {
      %c0_10 = arith.constant 0 : index
      %c0_11 = arith.constant 0 : index
      %21 = vector.load %arg4[%c0_10, %c0_11] : memref<1x128xf32, #tpu.memory_space<vmem>>, vector<1x128xf32>
      %22 = vector.shape_cast %21 : vector<1x128xf32> to vector<1x1x128xf32>
      %cst = arith.constant dense<0.000000e+00> : vector<1xf32>
      %23 = vector.multi_reduction <add>, %22, %cst [1, 2] : vector<1x1x128xf32> to vector<1xf32>
      %24 = vector.shape_cast %23 : vector<1xf32> to vector<1x1x1xf32>
      %25 = vector.extract %24[0, 0, 0] : f32 from vector<1x1x1xf32>
      %cst_12 = arith.constant 1.562500e-02 : f32
      %26 = arith.mulf %25, %cst_12 : f32
      %c0_13 = arith.constant 0 : index
      %c0_14 = arith.constant 0 : index
      %27 = memref.load %arg3[%c0_13, %c0_14] : memref<1x1xf32, #tpu.memory_space<smem>>
      memref.store %26, %arg3[%c0_13, %c0_14] : memref<1x1xf32, #tpu.memory_space<smem>>
    } else {
    }
    return
  }
  func.func @transform_0(%arg0: i32) -> (i32, i32) {
    %c0_i32 = arith.constant 0 : i32
    %c0_i32_0 = arith.constant 0 : i32
    return %c0_i32, %arg0 : i32, i32
  }
  func.func @transform_1(%arg0: i32) -> (i32, i32) {
    %c0_i32 = arith.constant 0 : i32
    %c0_i32_0 = arith.constant 0 : i32
    return %c0_i32, %arg0 : i32, i32
  }
  func.func @transform_2(%arg0: i32) -> (i32, i32) {
    %c0_i32 = arith.constant 0 : i32
    %c0_i32_0 = arith.constant 0 : i32
    %c0_i32_1 = arith.constant 0 : i32
    return %c0_i32, %c0_i32_0 : i32, i32
  }
}

</mosaic_0001>

<bundles_post_ra>
// kernel: med_loss.1
= control target key start
LH: loop header
LB: loop body
LE: loop exit
PB: predicated region body
PF: predicated region fallthrough
CT: control target
= control target key end

     0   :  { %v85_v2 = vmov 0.0   ;;  %s111_s0 = inlined_call_operand.vmem [shape: f32[3,128], index: 0, kind: input, shape index: {}]   ;;  %s112_s1 = inlined_call_operand.vmem [shape: f32[3,128], index: 1, kind: input, shape index: {}]   ;;  %s113_s2 = inlined_call_operand.hbm [shape: f32[1,1], index: 2, kind: output, shape index: {}]  }
   0x1   :  { %v17_v0 = vld [vmem:[%s111_s0] sm:$0x7]  ;;  %16 = vst [vmem:[#allocation2] sm:$0x1] %v85_v2 }
   0x2   :  { %v18_v1 = vld [vmem:[%s112_s1] sm:$0x7] }
   0x3   :  { %v19_v3 = vsub.f32 %v17_v0, %v18_v1 }
   0x4   :  { %7 = vsyncpa [#allocation4], 0  ;;  %vm42_vm2 = vcmask 1040384   ;;  %s86_s13 = smov [#allocation3]  }
   0x5   :  { %v20_v4 = vmul.f32 %v19_v3, %v19_v3 }
   0x7   :  { %v22_v5 = vrot.slane %v20_v4, 1  ;;  %v25_v6 = vrot.slane %v20_v4, 2 }
   0x8   :  { %v28_v12 = vld [vmem:[#allocation2] sm:$0x1] }
   0x9   :  { %v24_v7 = vadd.f32 %v22_v5, %v20_v4 }
   0xb   :  { %v27_v8 = vadd.f32 %v25_v6, %v24_v7 }
   0xd   :  { %73 = vrsqrt.f32 %v27_v8  ;;  %vm31_vm0 = vcmp.eq.f32.partialorder %v27_v8, inf  ;;  %v34_v10 = vand.u32 2147483648, %v27_v8  ;;  %vm33_vm1 = vcmp.eq.f32.partialorder %v27_v8, 0.0 }
  0x1a   :  { %v74_v9 = vpop.eup %73 }
  0x1b   :  { %v30_v11 = vmul.f32 %v74_v9, %v27_v8 }
  0x1d   :  { %v32_v13 = vsel %vm31_vm0, %v27_v8, %v30_v11 }
  0x1e   :  { %v35_v14 = vsel %vm33_vm1, %v34_v10, %v32_v13 }
  0x1f   :  { %v36_v15 = vadd.f32 %v35_v14, %v28_v12 }
  0x21   :  { %37 = vst [vmem:[#allocation2] sm:$0x1] %v36_v15 }
  0x28   :  { %v41_v16 = vld [vmem:[#allocation2] sm:$0x1] }
  0x29   :  { %v43_v17 = vsel %vm42_vm2, %v41_v16, 0.0 }
  0x2a   :  { %44 = vadd.xlane.f32.xlu0 %v43_v17 }
  0xb3   :  { %v45_v18 = vpop.xlane.xlu0 %44 }
  0xb4   :  { %v46_v19 = vrot.slane %v45_v18, 4 }
  0xb6   :  { %v47_v20 = vadd.f32 %v46_v19, %v45_v18 }
  0xb8   :  { %v48_v21 = vrot.slane %v47_v20, 2 }
  0xba   :  { %v49_v22 = vadd.f32 %v48_v21, %v47_v20 }
  0xbc   :  { %v50_v23 = vrot.slane %v49_v22, 1 }
  0xbe   :  { %v51_v24 = vadd.f32 %v50_v23, %v49_v22 }
  0xc0   :  { %69 = vpush %v51_v24 }
  0xf1   :  { %s70_s0 = spop %69 }
  0xf2   :  { %s53_s1 = smul.f32 0.015625, %s70_s0 }
  0xf4   :  { %55 = sst [smem:[#allocation3]] %s53_s1 }
  0xf5   :  { %63 = dma.smem_to_hbm %s86_s13, 16, %s113_s2, [#allocation4]  }
  0xf6   :  { %83 = dma.done.wait [#allocation4], 16  }
  0xf7   :  { %84 = vsyncadd [#allocation4], 4294967280 }
  0xf8   :  { %67 = sfence }
  0xf9   :  { %68 = vsyncpa [#allocation4], 1 }

</bundles_post_ra>
